<compile_context>
chip_gen: v5e
topology: v5e:2x2
jax: 0.10.0
libtpu: 0.0.40
codegen_flags: <defaults>
</compile_context>

<pallas_src>
import functools

import jax
import jax.numpy as jnp
from jax.experimental import pallas as pl
from jax.experimental.pallas import tpu as pltpu


def _cci_kernel(x_ref, wt_ref, b_ref, o_ref, acc_ref, *, inv_hw):
    # x_ref:  (1, bB, C, tHW)   wt_ref: (C, C2)   b_ref: (1, C2)
    # o_ref:  (1, bB, C2)       acc_ref: (bB, C) f32 scratch (GAP sums)
    hw = pl.program_id(1)

    @pl.when(hw == 0)
    def _():
        acc_ref[...] = jnp.zeros_like(acc_ref)

    # Partial spatial sum for this HW tile (accumulate in f32).
    acc_ref[...] += jnp.sum(x_ref[0].astype(jnp.float32), axis=-1)  # (bB, C)

    @pl.when(hw == pl.num_programs(1) - 1)
    def _():
        gap = acc_ref[...] * inv_hw                                  # (bB, C)
        # 1x1 conv on a 1x1 spatial map == dense: gap @ W.T + b
        y = jnp.dot(gap, wt_ref[...],
                    preferred_element_type=jnp.float32) + b_ref[...]  # (bB, C2)
        # softmax over the singleton attention dim is identically 1 -> out == y
        o_ref[0] = y.astype(o_ref.dtype)


def cross_channel_interaction(x, w, b, *, bB=None, tHW=None):
    """x: (B, C, H, W); w: (C//2, C); b: (C//2,). Returns (B, C//2, 1, 1) f32."""
    B, C, H, W = x.shape
    C2 = w.shape[0]
    HW = H * W
    LANE = 128

    # Pad the spatial (lane) dim up to a multiple of 128; zero-padding does not
    # change the spatial sum (we divide by the true HW).
    HWp = ((HW + LANE - 1) // LANE) * LANE

    # Batch tile: amortize per-step overhead for large B, but keep >= 2 steps on
    # the parallel axis when possible (v7x has 2 TensorCores).
    if bB is None:
        bB = 1
        for cand in (8, 4, 2):
            if B % cand == 0 and B // cand >= 2:
                bB = cand
                break
    assert B % bB == 0
    Bg = B // bB

    # HW tile: multiple of 128, bounded so the double-buffered input block stays
    # well inside scoped VMEM on all generations (v7x: 64 MiB physical).
    if tHW is None:
        budget = 8 * 1024 * 1024  # ~8 MiB per input block
        max_lanes = max(LANE, (budget // max(1, bB * C * 4)) // LANE * LANE)
        tHW = min(HWp, max_lanes)
    n_hw = pl.cdiv(HWp, tHW)
    HWp = n_hw * tHW  # make tHW divide the padded spatial extent

    x_flat = x.reshape(B, C, HW)
    if HWp != HW:
        x_flat = jnp.pad(x_flat, ((0, 0), (0, 0), (0, HWp - HW)))
    x_blk = x_flat.reshape(Bg, bB, C, HWp)

    wt = w.T.astype(jnp.float32)                 # (C, C2) — lane-dense output of matmul
    b2 = b.reshape(1, C2).astype(jnp.float32)    # (1, C2)

    kernel = functools.partial(_cci_kernel, inv_hw=1.0 / float(HW))

    out = pl.pallas_call(
        kernel,
        out_shape=jax.ShapeDtypeStruct((Bg, bB, C2), jnp.float32),
        grid_spec=pltpu.PrefetchScalarGridSpec(
            num_scalar_prefetch=0,
            grid=(Bg, n_hw),                          # reduction (HW) axis last
            in_specs=[
                pl.BlockSpec((1, bB, C, tHW), lambda i, k: (i, 0, 0, k)),
                pl.BlockSpec((C, C2), lambda i, k: (0, 0)),
                pl.BlockSpec((1, C2), lambda i, k: (0, 0)),
            ],
            out_specs=pl.BlockSpec((1, bB, C2), lambda i, k: (i, 0, 0)),
            scratch_shapes=[pltpu.VMEM((bB, C), jnp.float32)],
        ),
        compiler_params=pltpu.CompilerParams(
            dimension_semantics=("parallel", "arbitrary")),
    )(x_blk, wt, b2)

    return out.reshape(B, C2, 1, 1)


def _reference(x, w, b):
    # Pure-JAX reference of the PyTorch forward.
    B, C, H, W = x.shape
    gap = jnp.mean(x.astype(jnp.float32), axis=(2, 3))  # (B, C)
    y = gap @ w.T + b                                    # (B, C2)
    q = y[:, None, :]                                    # (B, 1, C2)
    k = y[:, :, None]                                    # (B, C2, 1)
    v = y[:, :, None]                                    # (B, C2, 1)
    energy = jnp.einsum('bij,bjk->bik', q, k)            # (B, 1, 1)
    att = jax.nn.softmax(energy, axis=-1)                # (B, 1, 1) == 1
    out = jnp.einsum('bij,bjk->bik', v, att)             # (B, C2, 1)
    return out.reshape(B, -1, 1, 1)


if __name__ == "__main__":
    key = jax.random.PRNGKey(0)
    B, C, H, W = 2, 4, 16, 16
    C2 = C // 2

    k_x, k_w, k_b = jax.random.split(key, 3)
    x = jax.random.normal(k_x, (B, C, H, W), dtype=jnp.float32)

    # Conv2d(C, C//2, 1) weight/bias init (kaiming-uniform-ish bounds).
    bound = 1.0 / (C ** 0.5)
    w = jax.random.uniform(k_w, (C2, C), minval=-bound, maxval=bound, dtype=jnp.float32)
    b = jax.random.uniform(k_b, (C2,), minval=-bound, maxval=bound, dtype=jnp.float32)

    # Q1/K1/V1 Conv1d(1,1,1) and sigmoid are defined by the module but unused
    # in forward(), so they are intentionally not instantiated here.

    out = cross_channel_interaction(x, w, b)
    out = jax.block_until_ready(out)

    ref = _reference(x, w, b)
    assert out.shape == (B, C2, 1, 1)
    assert jnp.allclose(out, ref, atol=1e-5, rtol=1e-5), (out, ref)

    print("KERNEL_OK")
</pallas_src>

<mosaic_0001>
module attributes {stable_mosaic.version = 11 : i64} {
  func.func @_cci_kernel(%arg0: i32, %arg1: i32, %arg2: memref<1x1x4x256xf32, #tpu.memory_space<vmem>>, %arg3: memref<4x2xf32, #tpu.memory_space<vmem>>, %arg4: memref<1x2xf32, #tpu.memory_space<vmem>>, %arg5: memref<1x1x2xf32, #tpu.memory_space<vmem>>, %arg6: memref<1x4xf32, #tpu.memory_space<vmem>>) attributes {dimension_semantics = [#tpu.dimension_semantics<parallel>, #tpu.dimension_semantics<arbitrary>], iteration_bounds = array<i64: 2, 1>, scalar_prefetch = 0 : i64, scratch_operands = 1 : i64, tpu.core_type = #tpu.core_type<tc>, window_params = [{transform_indices = @transform_0, window_bounds = array<i64: 1, 1, 4, 256>}, {pipeline_mode = #tpu.pipeline_mode<synchronous>, transform_indices = @transform_1, window_bounds = array<i64: 4, 2>}, {pipeline_mode = #tpu.pipeline_mode<synchronous>, transform_indices = @transform_2, window_bounds = array<i64: 1, 2>}, {transform_indices = @transform_3, window_bounds = array<i64: 1, 1, 2>}]} {
    %c0_i32 = arith.constant 0 : i32
    %0 = arith.cmpi eq, %arg1, %c0_i32 : i32
    %1 = arith.extui %0 : i1 to i32
    %c0_i32_0 = arith.constant 0 : i32
    %2 = arith.cmpi ne, %1, %c0_i32_0 : i32
    scf.if %2 {
      %cst_10 = arith.constant 0.000000e+00 : f32
      %12 = vector.broadcast %cst_10 : f32 to vector<1x4xf32>
      %c0_11 = arith.constant 0 : index
      %c0_12 = arith.constant 0 : index
      %13 = vector.load %arg6[%c0_11, %c0_12] : memref<1x4xf32, #tpu.memory_space<vmem>>, vector<1x4xf32>
      tpu.vector_store %arg6[%c0_11, %c0_12], %12 {strides = array<i32>} : memref<1x4xf32, #tpu.memory_space<vmem>>, vector<1x4xf32>,
    } else {
    }
    %c0 = arith.constant 0 : index
    %c0_1 = arith.constant 0 : index
    %3 = vector.load %arg6[%c0, %c0_1] : memref<1x4xf32, #tpu.memory_space<vmem>>, vector<1x4xf32>
    %c0_2 = arith.constant 0 : index
    %c0_3 = arith.constant 0 : index
    %c0_4 = arith.constant 0 : index
    %c0_5 = arith.constant 0 : index
    %4 = vector.load %arg2[%c0_2, %c0_3, %c0_4, %c0_5] : memref<1x1x4x256xf32, #tpu.memory_space<vmem>>, vector<1x1x4x256xf32>
    %5 = vector.shape_cast %4 : vector<1x1x4x256xf32> to vector<1x4x256xf32>
    %cst = arith.constant dense<0.000000e+00> : vector<1x4xf32>
    %6 = vector.multi_reduction <add>, %5, %cst [2] : vector<1x4x256xf32> to vector<1x4xf32>
    %7 = arith.addf %3, %6 : vector<1x4xf32>
    %c0_6 = arith.constant 0 : index
    %c0_7 = arith.constant 0 : index
    %8 = vector.load %arg6[%c0_6, %c0_7] : memref<1x4xf32, #tpu.memory_space<vmem>>, vector<1x4xf32>
    tpu.vector_store %arg6[%c0_6, %c0_7], %7 {strides = array<i32>} : memref<1x4xf32, #tpu.memory_space<vmem>>, vector<1x4xf32>,
    %c0_i32_8 = arith.constant 0 : i32
    %9 = arith.cmpi eq, %arg1, %c0_i32_8 : i32
    %10 = arith.extui %9 : i1 to i32
    %c0_i32_9 = arith.constant 0 : i32
    %11 = arith.cmpi ne, %10, %c0_i32_9 : i32
    scf.if %11 {
      %c0_10 = arith.constant 0 : index
      %c0_11 = arith.constant 0 : index
      %12 = vector.load %arg6[%c0_10, %c0_11] : memref<1x4xf32, #tpu.memory_space<vmem>>, vector<1x4xf32>
      %cst_12 = arith.constant 3.906250e-03 : f32
      %13 = vector.broadcast %cst_12 : f32 to vector<1x4xf32>
      %14 = arith.mulf %12, %13 : vector<1x4xf32>
      %c0_13 = arith.constant 0 : index
      %c0_14 = arith.constant 0 : index
      %15 = vector.load %arg3[%c0_13, %c0_14] : memref<4x2xf32, #tpu.memory_space<vmem>>, vector<4x2xf32>
      %cst_15 = arith.constant dense<0.000000e+00> : vector<1x2xf32>
      %16 = tpu.matmul %14, %15, %cst_15 {dimension_numbers = #tpu.dot_dimension_numbers<[1], [0], [0], [1], [0, 0, 1, 1], [], []>} : vector<1x4xf32>, vector<4x2xf32>, vector<1x2xf32> -> vector<1x2xf32>
      %c0_16 = arith.constant 0 : index
      %c0_17 = arith.constant 0 : index
      %17 = vector.load %arg4[%c0_16, %c0_17] : memref<1x2xf32, #tpu.memory_space<vmem>>, vector<1x2xf32>
      %18 = arith.addf %16, %17 : vector<1x2xf32>
      %c0_18 = arith.constant 0 : index
      %c0_19 = arith.constant 0 : index
      %c0_20 = arith.constant 0 : index
      %19 = vector.load %arg5[%c0_18, %c0_19, %c0_20] : memref<1x1x2xf32, #tpu.memory_space<vmem>>, vector<1x1x2xf32>
      %20 = vector.shape_cast %19 : vector<1x1x2xf32> to vector<1x2xf32>
      %21 = vector.shape_cast %18 : vector<1x2xf32> to vector<1x1x2xf32>
      tpu.vector_store %arg5[%c0_18, %c0_19, %c0_20], %21 {strides = array<i32>} : memref<1x1x2xf32, #tpu.memory_space<vmem>>, vector<1x1x2xf32>,
    } else {
    }
    return
  }
  func.func @transform_0(%arg0: i32, %arg1: i32) -> (i32, i32, i32, i32) {
    %c0_i32 = arith.constant 0 : i32
    %c0_i32_0 = arith.constant 0 : i32
    %c0_i32_1 = arith.constant 0 : i32
    return %arg0, %c0_i32, %c0_i32_0, %arg1 : i32, i32, i32, i32
  }
  func.func @transform_1(%arg0: i32, %arg1: i32) -> (i32, i32) {
    %c0_i32 = arith.constant 0 : i32
    %c0_i32_0 = arith.constant 0 : i32
    %c0_i32_1 = arith.constant 0 : i32
    return %c0_i32, %c0_i32_0 : i32, i32
  }
  func.func @transform_2(%arg0: i32, %arg1: i32) -> (i32, i32) {
    %c0_i32 = arith.constant 0 : i32
    %c0_i32_0 = arith.constant 0 : i32
    %c0_i32_1 = arith.constant 0 : i32
    return %c0_i32, %c0_i32_0 : i32, i32
  }
  func.func @transform_3(%arg0: i32, %arg1: i32) -> (i32, i32, i32) {
    %c0_i32 = arith.constant 0 : i32
    %c0_i32_0 = arith.constant 0 : i32
    %c0_i32_1 = arith.constant 0 : i32
    return %arg0, %c0_i32, %c0_i32_0 : i32, i32, i32
  }
}

</mosaic_0001>

<bundles_post_ra>
// kernel: tpu_custom_call.1
= control target key start
LH: loop header
LB: loop body
LE: loop exit
PB: predicated region body
PF: predicated region fallthrough
CT: control target
= control target key end

     0   :  { %8 = vsyncpa [#allocation4], 0  ;;  %s721_s0 = inlined_call_operand.hbm [shape: f32[2,1,4,256], index: 0, kind: input, shape index: {}]   ;;  %s722_s1 = inlined_call_operand.vmem [shape: f32[4,2], index: 1, kind: input, shape index: {}]   ;;  %s723_s2 = inlined_call_operand.vmem [shape: f32[1,2], index: 2, kind: input, shape index: {}]   ;;  %s724_s3 = inlined_call_operand.hbm [shape: f32[2,1,2], index: 3, kind: output, shape index: {}]  }
   0x1   :  { %10 = vsyncpa [#allocation4 + $0x1], 0 }
   0x2   :  { %11 = vsyncpa [#allocation5], 0 }
   0x3   :  { %13 = vsyncpa [#allocation5 + $0x1], 0  ;;  %s589_s12 = smov 0   ;;  %s591_s13 = smov 0  }
   0x4   :  { %s593_s14 = smov 0   ;;  %s595_s15 = smov 0  }
   0x5   :  { %s597_s16 = smov 0   ;;  %s599_s17 = smov 0  }
   0x6 LB: > { %s374_s18 = sadd.s32 4294967295, %s565_s17   ;;  %s375_s19 = sadd.s32 4294967294, %s565_s17   ;;  %s565_s17 = sphi %s599_s17, %s19_s17   ;;  %s561_s16 = sphi %s597_s16, %s733_s16   ;;  %s557_s15 = sphi %s595_s15, %s732_s15   ;;  %s553_s14 = sphi %s593_s14, %s731_s14   ;;  %s549_s13 = sphi %s591_s13, %s730_s13   ;;  %s545_s12 = sphi %s589_s12, %s729_s12  }
   0x7   : > { %s31_s20 = sadd.s32 1, %s561_s16  ;;  %s40_s21 = sadd.s32 1, %s553_s14 }
   0x8   : > { %p33_p0 = scmp.ge.s32.totalorder %s31_s20, 2  ;;  %p47_p1 = scmp.ne.s32.totalorder %s553_s14, %s549_s13 }
   0x9   : > { %p48_p2 = scmp.eq.s32.totalorder %s565_s17, 0  ;;  %p53_p3 = scmp.ne.s32.totalorder %s549_s13, %s545_s12 }
   0xa   : > { %s735_s20 = smov (%p33_p0, %s31_s20), 0  ;;  %p54_p5 = scmp.eq.s32.totalorder %s374_s18, 0 }
   0xb   : > { %p630_p4 = por %p48_p2, %p47_p1  ;;  %s35_s23 = ssub.s32 %s561_s16, %s735_s20 }
   0xc   : > { %p119_p6 = scmp.eq.s32.totalorder %s374_s18, 1  ;;  %p38_p7 = scmp.eq.s32.totalorder %s35_s23, 0 }
   0xd   : > { %p636_p8 = por %p54_p5, %p53_p3  ;;  %p125_p10 = scmp.eq.s32.totalorder %s375_s19, 1 }
   0xe   : > { %p640_p9 = por %p119_p6, %p47_p1  ;;  %p377_p12 = scmp.ge.s32.totalorder %s565_s17, 2 }
   0xf   : > { %s645_s26 = scalar_select %p38_p7, %s553_s14, %s40_s21  }
  0x10   : > { %p647_p11 = por %p125_p10, %p53_p3  ;;  %p400_p13 = scmp.lt.s32.totalorder %s565_s17, 2 }
  0x11   : > { %s151_s28 = sand.u32 1, %s553_s14   ;;  %s387_s30 = sshll.u32 %s561_s16, 3 }
  0x12   : > { %s378_s29 = sshll.u32 %s151_s28, 3  ;;  %s162_s6 = scalar_lea.hbm %s721_s0, %s387_s30 }
  0x13   : > { %s155_s7 = scalar_lea.vmem [#allocation3], %s378_s29  ;;  %s164_s9 = sshll.u32 %s162_s6, 4  ;;  %s165_s9 = int_to_ptr.hbm [resolvable:$true] %s164_s9 }
  0x14   : > { %s166_s8 = sshll.u32 %s155_s7, 4  ;;  %p393_p0 = pnand %p400_p13, %p630_p4  ;;  %s167_s8 = int_to_ptr.vmem [resolvable:$true] %s166_s8 }
  0x15   : > { %p381_p1 = scmp.ge.s32.totalorder %s565_s17, 1  ;;  %p171_p2 = scmp.lt.s32.totalorder %s565_s17, 3 }
  0x16   : > { %s152_s10 = scalar_lea.sflag [#allocation4], %s151_s28 }
  0x17   : > { %395 = dma.hbm_to_vmem [thread:$0]  (!%p393_p0), %s165_s9, 128, %s167_s8, %s152_s10  }
  0x18   : > { %p172_p3 = pnand %p381_p1, %p171_p2 }
  0x19   : > { %s663_s11 = sand.u32 (!%p172_p3), 1, %s549_s13  }
  0x1a   : > { %175 = sbr.rel (%p172_p3) target bundleno = 433 (0x1b1), region = 32  ;;  %s382_s18 = sshll.u32 (!%p172_p3), %s663_s11, 3 }
  0x1b   : > { %s178_s19 = scalar_lea.sflag (!%p172_p3), [#allocation4], %s663_s11  ;;  %s181_s21 = scalar_lea.vmem (!%p172_p3), [#allocation3], %s382_s18 }
  0x1f   : > { %536 = dma.done.wait (%p636_p8), %s178_s19, 128  }
  0x20   : > { %538 = vsyncadd (%p636_p8), %s178_s19, 4294967168  ;;  %v212_v0 = vld [vmem:[%s181_s21] sm:$0xff]  ;;  %vm219_vm0 = vcmask 1043456   ;;  %v567_v6 = vmov 0   ;;  %vm209_vm1 = vcmask 24576   ;;  %v568_v7 = vmov 0.0   ;;  %s293_s29 = scalar_lea.hbm %s724_s3, %s557_s15 }
  0x21   : > { %214 = vst [vmem:[#allocation1] ss:$2 sm:$0xff] %v212_v0  ;;  %452 = vset.pattern.permute.xlu0 %v567_v6  ;;  %v253_v14 = vld [vmem:[%s722_s1] sm:$0xf]  ;;  %v241_v15 = vlaneseq  ;;  %vm255_vm2 = vcmask 31744   ;;  %s203_s5 = scalar_lea.vmem [#allocation6], %s663_s11 }
  0x22   : > { %210 = vst.msk [vmem:[#allocation2] sm:$0x1] %vm209_vm1, %v568_v7  ;;  %383 = vmatpush.msk.msra.mxu0 %vm219_vm0, %v253_v14  ;;  %v254_v23 = vld [vmem:[%s723_s2] sm:$0x1]  ;;  %s295_s6 = sshll.u32 %s203_s5, 4  ;;  %s297_s7 = sshll.u32 %s293_s29, 4  ;;  %s296_s6 = int_to_ptr.vmem [resolvable:$true] %s295_s6  ;;  %s298_s7 = int_to_ptr.hbm [resolvable:$true] %s297_s7 }
  0x23   : > { %v242_v16 = vand.u32 127, %v241_v15  ;;  %vm282_vm3 = vcmask 8192   ;;  %s285_s8 = scalar_lea.sflag [#allocation5], %s663_s11  ;;  %s497_s9 = sshra.s32 %s298_s7, 4  ;;  %s498_s9 = int_to_ptr.hbm [resolvable:$true] %s497_s9 }
  0x24   : > { %s499_s10 = scalar_lea.hbm %s498_s9, 1  ;;  %s503_s19 = scalar_lea.hbm %s724_s3, 2 }
  0x25   : > { %p500_p4 = scmp.ne.s32.totalorder %s498_s9, %s499_s10  ;;  %p504_p7 = scmp.lt.s32.totalorder %s498_s9, %s724_s3 }
  0x26   : > { %p505_p8 = scmp.lt.s32.totalorder %s503_s19, %s499_s10 }
  0x27   : > { %p501_p5 = pnand %p500_p4, %p640_p9 }
  0x28   : > { %v215_v1 = vld.sshfl [vmem:[#allocation1] sm:$0xff pattern:$0x75316420]  ;;  %v216_v2 = vld.sshfl [vmem:[#allocation1 + $0x8] sm:$0xff pattern:$0x75316420]  ;;  %p506_p10 = por %p505_p8, %p504_p7 }
  0x29   : > { %v220_v3 = vsel %vm219_vm0, %v215_v1, 0.0  ;;  %v221_v4 = vsel %vm219_vm0, %v216_v2, 0.0  ;;  %v211_v18 = vld [vmem:[#allocation2] sm:$0x1]  ;;  %p502_p6 = pneg %p501_p5 }
  0x2a   : > { %v222_v5 = vadd.f32 %v221_v4, %v220_v3 }
  0x2b   : > { %p507_p13 = pnand %p506_p10, %p502_p6 }
  0x2c   : > { %223 = vadd.xlane.f32.xlu0 %v222_v5 }
  0x9f   : > { %v224_v8 = vpop.xlane.xlu0 %223 }
  0xa0   : > { %v226_v9 = vperm.slane %v224_v8, 0  ;;  %v227_v10 = vperm.slane %v224_v8, 1  ;;  %v228_v11 = vperm.slane %v224_v8, 2  ;;  %v229_v12 = vperm.slane %v224_v8, 3 }
  0xa2   : > { %230 = vst [vmem:[#allocation1] ss:$9 sm:$0xff] %v226_v9 }
  0xa3   : > { %232 = vst [vmem:[#allocation1 + $0x1] ss:$9 sm:$0xff] %v227_v10 }
  0xa4   : > { %234 = vst [vmem:[#allocation1 + $0x2] ss:$9 sm:$0xff] %v228_v11 }
  0xa5   : > { %236 = vst [vmem:[#allocation1 + $0x3] ss:$9 sm:$0xff] %v229_v12 }
  0xac   : > { %v237_v13 = vld [vmem:[#allocation1] sm:$0xff] }
  0xad   : > { %239 = vperm.xlu0 %452, %v237_v13  }
 0x11f   : > { %v240_v17 = vpop.permute.xlu0 %239 }
 0x120   : > { %v243_v19 = vperm.slane %v240_v17, %v242_v16 }
 0x122   : > { %v245_v20 = vadd.f32 %v243_v19, %v211_v18 }
 0x124   : > { %247 = vst.msk [vmem:[#allocation2] sm:$0x1] %vm209_vm1, %v245_v20 }
 0x12b   : > { %v251_v21 = vld [vmem:[#allocation2] sm:$0x1] }
 0x12c   : > { %v252_v22 = vmul.f32 0.00390625, %v251_v21 }
 0x12e   : > { %384 = vmatmul.msk.f32.vlgmr.msra.gmra.mxu0 %vm255_vm2, %v252_v22 }
 0x1ab   : > { %v279_v24 = vpop.f32.mrf.mxu0 }
 0x1ac   : > { %v280_v25 = vadd.f32 %v279_v24, %v254_v23 }
 0x1ae   : > { %283 = vst.msk [vmem:[%s203_s5] sm:$0x1] %vm282_vm3, %v280_v25 }
 0x1af   : > { %510 = shalt.err (!%p507_p13)
}
 0x1b0   : > { %390 = dma.vmem_to_hbm [thread:$0]  (%p640_p9), %s296_s6, 16, %s298_s7, %s285_s8  }
 0x1b1 PF: > { %s309_s11 = sand.u32 1, %s545_s12   ;;  %p397_p0 = pnand %p377_p12, %p647_p11 }
 0x1b2   : > { %s310_s23 = scalar_lea.sflag [#allocation5], %s309_s11 }
 0x1b3   : > { %p398_p1 = pneg %p397_p0 }
 0x1b5   : > { %540 = dma.done.wait (%p398_p1), %s310_s23, 16  }
 0x1b6   : > { %542 = vsyncadd (%p398_p1), %s310_s23, 4294967280  ;;  %s19_s17 = sadd.s32 1, %s565_s17   ;;  %s729_s12 = smov %s549_s13 }
 0x1b7   : > { %p16_p2 = scmp.ge.s32.totalorder %s19_s17, 4   ;;  %s730_s13 = smov %s553_s14 }
 0x1b8   : > { %s731_s14 = smov %s645_s26  ;;  %s732_s15 = smov %s561_s16 }
 0x1b9   : > { %s733_s16 = smov %s735_s20  ;;  %18 = sbr.rel (!%p16_p2) target bundleno = 6 (0x6), region = 88 }
 0x1be   :  { %315 = vsyncpa [#allocation4], 1 }
 0x1bf   :  { %317 = vsyncpa [#allocation4 + $0x1], 1 }
 0x1c0   :  { %318 = vsyncpa [#allocation5], 1 }
 0x1c1   :  { %320 = vsyncpa [#allocation5 + $0x1], 1 }

</bundles_post_ra>
